<compile_context>
chip_gen: v5e
topology: v5e:2x2
jax: 0.10.0
libtpu: 0.0.40
codegen_flags: <defaults>
</compile_context>

<pallas_src>
import functools
import math

import jax
import jax.numpy as jnp
from jax.experimental import pallas as pl
from jax.experimental.pallas import tpu as pltpu

ACTION_BOUND_EPSILON = 1e-06
LOG_SIG_MAX = 2.0
LOG_SIG_MIN = -20.0
_HALF_LOG_2PI = 0.5 * math.log(2.0 * math.pi)


def _policy_kernel(obs_ref, w1_ref, w2_ref, wh_ref, b_ref, eps_ref, out_ref,
                   *, h1, h2, A, P, action_limit):
    """Fused MLP + tanh-gaussian head.

    obs_ref : [TB, obs_dim]  f32
    w*_ref  : weights, [in, out] (bf16 or f32; matmuls accumulate in f32)
    b_ref   : [1, h1+h2+2A]  packed biases, f32
    eps_ref : [TB, A]        standard-normal noise (zeros => deterministic)
    out_ref : [TB, P] lane-dense packed outputs:
              [ action | mean | log_std | std | pre_tanh | log_prob | 0-pad ]
    """
    wdt = w1_ref.dtype
    b = b_ref[...]                                  # one small f32 row
    b1 = b[:, :h1]
    b2 = b[:, h1:h1 + h2]
    bh = b[:, h1 + h2:h1 + h2 + 2 * A]

    # ---- hidden MLP (two layers, ReLU); MXU in bf16, f32 accumulation ----
    h = jnp.dot(obs_ref[...].astype(wdt), w1_ref[...],
                preferred_element_type=jnp.float32) + b1
    h = jnp.maximum(h, 0.0)
    h = jnp.dot(h.astype(wdt), w2_ref[...],
                preferred_element_type=jnp.float32) + b2
    h = jnp.maximum(h, 0.0)

    # ---- fused mean / log_std head: single [h2, 2A] matmul ----
    head = jnp.dot(h.astype(wdt), wh_ref[...],
                   preferred_element_type=jnp.float32) + bh
    mean = head[:, :A]
    log_std = jnp.clip(head[:, A:], LOG_SIG_MIN, LOG_SIG_MAX)
    std = jnp.exp(log_std)

    # Reparameterized sample; eps == 0 reproduces the deterministic path.
    eps = eps_ref[...]
    pre_tanh = mean + std * eps
    action = jnp.tanh(pre_tanh)

    # Normal(mean, std).log_prob(pre_tanh) with tanh-squash correction.
    # (pre_tanh - mean)^2 / (2*var) == eps^2 / 2 exactly -> no divide.
    log_prob = (-0.5 * eps * eps
                - log_std
                - _HALF_LOG_2PI
                - jnp.log(1.0 - action * action + ACTION_BOUND_EPSILON))
    logp = jnp.sum(log_prob, axis=1, keepdims=True)

    if action_limit != 1.0:                          # folded at trace time
        action = action * action_limit

    pieces = [action, mean, log_std, std, pre_tanh, logp]
    pad = P - (5 * A + 1)
    if pad > 0:
        pieces.append(jnp.zeros((action.shape[0], pad), jnp.float32))
    out_ref[...] = jnp.concatenate(pieces, axis=-1)  # single lane-dense store


def _pick_batch_tile(B):
    """Batch tile: multiples of 128 for large batches, else the whole batch."""
    for tb in (256, 128):
        if B >= tb and B % tb == 0:
            return tb
    return B


def pack_params(params, use_bf16_matmul=True):
    """Host-side packing: fuse head weights, concat biases, cast for MXU.

    Weights are expected as [in, out] (transpose of PyTorch's [out, in]).
    Note: on v5e keep non-matmul math in f32 (it is); bf16 here only feeds
    the MXU, which is bf16-native on v5e/v6e/v7x.
    """
    wdt = jnp.bfloat16 if use_bf16_matmul else jnp.float32
    return {
        "w1": params["w1"].astype(wdt),
        "w2": params["w2"].astype(wdt),
        "wh": jnp.concatenate([params["wm"], params["ws"]], axis=1).astype(wdt),
        "b": jnp.concatenate(
            [params["b1"], params["b2"], params["bm"], params["bs"]],
            axis=1).astype(jnp.float32),
    }


def tanh_gaussian_policy_forward(obs, packed, eps, action_limit=1.0):
    """Full TanhGaussianPolicy forward in one Pallas kernel.

    Returns (action*limit, mean, log_std, log_prob, std, pre_tanh), matching
    the PyTorch module.  `eps` is standard-normal noise (zeros => deterministic).
    """
    B, obs_dim = obs.shape
    h1 = packed["w1"].shape[1]
    h2 = packed["w2"].shape[1]
    two_a = packed["wh"].shape[1]
    A = two_a // 2
    P = ((5 * A + 1 + 127) // 128) * 128             # lane-dense output slab
    TB = _pick_batch_tile(B)
    nb = B // TB

    kernel = functools.partial(_policy_kernel, h1=h1, h2=h2, A=A, P=P,
                               action_limit=float(action_limit))

    packed_out = pl.pallas_call(
        kernel,
        out_shape=jax.ShapeDtypeStruct((B, P), jnp.float32),
        grid=(nb,),
        in_specs=[
            pl.BlockSpec((TB, obs_dim), lambda i: (i, 0)),      # obs (tiled rows)
            pl.BlockSpec((obs_dim, h1), lambda i: (0, 0)),      # w1 (resident)
            pl.BlockSpec((h1, h2), lambda i: (0, 0)),           # w2 (resident)
            pl.BlockSpec((h2, two_a), lambda i: (0, 0)),        # wm|ws fused
            pl.BlockSpec((1, h1 + h2 + two_a), lambda i: (0, 0)),  # packed biases
            pl.BlockSpec((TB, A), lambda i: (i, 0)),            # eps (tiled rows)
        ],
        out_specs=pl.BlockSpec((TB, P), lambda i: (i, 0)),
        compiler_params=pltpu.CompilerParams(
            dimension_semantics=("parallel",)),                 # megacore on v7x
    )(obs, packed["w1"], packed["w2"], packed["wh"], packed["b"], eps)

    action = packed_out[:, 0:A]
    mean = packed_out[:, A:2 * A]
    log_std = packed_out[:, 2 * A:3 * A]
    std = packed_out[:, 3 * A:4 * A]
    pre_tanh = packed_out[:, 4 * A:5 * A]
    log_prob = packed_out[:, 5 * A:5 * A + 1]
    return action, mean, log_std, log_prob, std, pre_tanh


def _reference_forward(obs, packed, eps, action_limit=1.0):
    """Pure-JAX reference on the same packed (bf16) params, for validation."""
    h1 = packed["w1"].shape[1]
    h2 = packed["w2"].shape[1]
    A = packed["wh"].shape[1] // 2
    b = packed["b"]
    wdt = packed["w1"].dtype
    h = jnp.maximum(jnp.dot(obs.astype(wdt), packed["w1"],
                            preferred_element_type=jnp.float32) + b[:, :h1], 0.0)
    h = jnp.maximum(jnp.dot(h.astype(wdt), packed["w2"],
                            preferred_element_type=jnp.float32)
                    + b[:, h1:h1 + h2], 0.0)
    head = jnp.dot(h.astype(wdt), packed["wh"],
                   preferred_element_type=jnp.float32) + b[:, h1 + h2:]
    mean = head[:, :A]
    log_std = jnp.clip(head[:, A:], LOG_SIG_MIN, LOG_SIG_MAX)
    std = jnp.exp(log_std)
    pre_tanh = mean + std * eps
    action = jnp.tanh(pre_tanh)
    log_prob = (-0.5 * eps * eps - log_std - _HALF_LOG_2PI
                - jnp.log(1.0 - action * action + ACTION_BOUND_EPSILON))
    log_prob = jnp.sum(log_prob, axis=1, keepdims=True)
    return action * action_limit, mean, log_std, log_prob, std, pre_tanh


def _xavier_uniform(key, fan_in, fan_out):
    bound = math.sqrt(6.0 / (fan_in + fan_out))
    # stored directly as [in, out] (transpose of PyTorch's [out, in] layout)
    return jax.random.uniform(key, (fan_in, fan_out), jnp.float32, -bound, bound)


def init_params(key, obs_dim, action_dim, hidden_sizes):
    assert len(hidden_sizes) == 2, "kernel hardcodes two hidden layers"
    h1, h2 = hidden_sizes
    k1, k2, k3, k4 = jax.random.split(key, 4)
    return {
        "w1": _xavier_uniform(k1, obs_dim, h1),
        "b1": jnp.zeros((1, h1), jnp.float32),
        "w2": _xavier_uniform(k2, h1, h2),
        "b2": jnp.zeros((1, h2), jnp.float32),
        "wm": _xavier_uniform(k3, h2, action_dim),
        "bm": jnp.zeros((1, action_dim), jnp.float32),
        "ws": _xavier_uniform(k4, h2, action_dim),
        "bs": jnp.zeros((1, action_dim), jnp.float32),
    }


if __name__ == "__main__":
    obs_dim, action_dim, hidden_sizes = 16, 8, (32, 32)
    batch = 2

    root = jax.random.PRNGKey(0)
    k_params, k_obs, k_eps = jax.random.split(root, 3)

    params = init_params(k_params, obs_dim, action_dim, hidden_sizes)
    packed = pack_params(params, use_bf16_matmul=True)   # one-time host packing
    obs = jax.random.normal(k_obs, (batch, obs_dim), jnp.float32)
    eps = jax.random.normal(k_eps, (batch, action_dim), jnp.float32)  # rsample noise

    outs = jax.block_until_ready(
        tanh_gaussian_policy_forward(obs, packed, eps, action_limit=1.0))
    action, mean, log_std, log_prob, std, pre_tanh = outs

    assert action.shape == (batch, action_dim)
    assert mean.shape == (batch, action_dim)
    assert log_std.shape == (batch, action_dim)
    assert log_prob.shape == (batch, 1)
    assert std.shape == (batch, action_dim)
    assert pre_tanh.shape == (batch, action_dim)
    for o in outs:
        assert bool(jnp.all(jnp.isfinite(o)))

    # Validate against a pure-JAX reference on the same packed params.
    ref = _reference_forward(obs, packed, eps, action_limit=1.0)
    for got, want in zip(outs, ref):
        assert jnp.allclose(got, want, atol=1e-2, rtol=1e-2)

    print("KERNEL_OK")
</pallas_src>

<mosaic_0001>
module attributes {stable_mosaic.version = 11 : i64} {
  func.func @_policy_kernel(%arg0: i32, %arg1: memref<2x16xf32, #tpu.memory_space<vmem>>, %arg2: memref<16x32xbf16, #tpu.memory_space<vmem>>, %arg3: memref<32x32xbf16, #tpu.memory_space<vmem>>, %arg4: memref<32x16xbf16, #tpu.memory_space<vmem>>, %arg5: memref<1x80xf32, #tpu.memory_space<vmem>>, %arg6: memref<2x8xf32, #tpu.memory_space<vmem>>, %arg7: memref<2x128xf32, #tpu.memory_space<vmem>>) attributes {dimension_semantics = [#tpu.dimension_semantics<parallel>], iteration_bounds = array<i64: 1>, scalar_prefetch = 0 : i64, scratch_operands = 0 : i64, tpu.core_type = #tpu.core_type<tc>, window_params = [{transform_indices = @transform_0, window_bounds = array<i64: 2, 16>}, {pipeline_mode = #tpu.pipeline_mode<synchronous>, transform_indices = @transform_1, window_bounds = array<i64: 16, 32>}, {pipeline_mode = #tpu.pipeline_mode<synchronous>, transform_indices = @transform_2, window_bounds = array<i64: 32, 32>}, {pipeline_mode = #tpu.pipeline_mode<synchronous>, transform_indices = @transform_3, window_bounds = array<i64: 32, 16>}, {pipeline_mode = #tpu.pipeline_mode<synchronous>, transform_indices = @transform_4, window_bounds = array<i64: 1, 80>}, {transform_indices = @transform_5, window_bounds = array<i64: 2, 8>}, {transform_indices = @transform_6, window_bounds = array<i64: 2, 128>}]} {
    %c0 = arith.constant 0 : index
    %c0_0 = arith.constant 0 : index
    %0 = vector.load %arg5[%c0, %c0_0] : memref<1x80xf32, #tpu.memory_space<vmem>>, vector<1x80xf32>
    %1 = vector.extract_strided_slice %0 {offsets = [0, 0], sizes = [1, 32], strides = [1, 1]} : vector<1x80xf32> to vector<1x32xf32>
    %2 = vector.extract_strided_slice %0 {offsets = [0, 32], sizes = [1, 32], strides = [1, 1]} : vector<1x80xf32> to vector<1x32xf32>
    %3 = vector.extract_strided_slice %0 {offsets = [0, 64], sizes = [1, 16], strides = [1, 1]} : vector<1x80xf32> to vector<1x16xf32>
    %c0_1 = arith.constant 0 : index
    %c0_2 = arith.constant 0 : index
    %4 = vector.load %arg1[%c0_1, %c0_2] : memref<2x16xf32, #tpu.memory_space<vmem>>, vector<2x16xf32>
    %5 = arith.truncf %4 : vector<2x16xf32> to vector<2x16xbf16>
    %c0_3 = arith.constant 0 : index
    %c0_4 = arith.constant 0 : index
    %6 = vector.load %arg2[%c0_3, %c0_4] : memref<16x32xbf16, #tpu.memory_space<vmem>>, vector<16x32xbf16>
    %cst = arith.constant dense<0.000000e+00> : vector<2x32xf32>
    %7 = tpu.matmul %5, %6, %cst {dimension_numbers = #tpu.dot_dimension_numbers<[1], [0], [0], [1], [0, 0, 1, 1], [], []>} : vector<2x16xbf16>, vector<16x32xbf16>, vector<2x32xf32> -> vector<2x32xf32>
    %8 = vector.broadcast %1 : vector<1x32xf32> to vector<2x32xf32>
    %9 = arith.addf %7, %8 : vector<2x32xf32>
    %cst_5 = arith.constant 0.000000e+00 : f32
    %10 = vector.broadcast %cst_5 : f32 to vector<2x32xf32>
    %11 = arith.maximumf %9, %10 : vector<2x32xf32>
    %12 = arith.truncf %11 : vector<2x32xf32> to vector<2x32xbf16>
    %c0_6 = arith.constant 0 : index
    %c0_7 = arith.constant 0 : index
    %13 = vector.load %arg3[%c0_6, %c0_7] : memref<32x32xbf16, #tpu.memory_space<vmem>>, vector<32x32xbf16>
    %cst_8 = arith.constant dense<0.000000e+00> : vector<2x32xf32>
    %14 = tpu.matmul %12, %13, %cst_8 {dimension_numbers = #tpu.dot_dimension_numbers<[1], [0], [0], [1], [0, 0, 1, 1], [], []>} : vector<2x32xbf16>, vector<32x32xbf16>, vector<2x32xf32> -> vector<2x32xf32>
    %15 = vector.broadcast %2 : vector<1x32xf32> to vector<2x32xf32>
    %16 = arith.addf %14, %15 : vector<2x32xf32>
    %cst_9 = arith.constant 0.000000e+00 : f32
    %17 = vector.broadcast %cst_9 : f32 to vector<2x32xf32>
    %18 = arith.maximumf %16, %17 : vector<2x32xf32>
    %19 = arith.truncf %18 : vector<2x32xf32> to vector<2x32xbf16>
    %c0_10 = arith.constant 0 : index
    %c0_11 = arith.constant 0 : index
    %20 = vector.load %arg4[%c0_10, %c0_11] : memref<32x16xbf16, #tpu.memory_space<vmem>>, vector<32x16xbf16>
    %cst_12 = arith.constant dense<0.000000e+00> : vector<2x16xf32>
    %21 = tpu.matmul %19, %20, %cst_12 {dimension_numbers = #tpu.dot_dimension_numbers<[1], [0], [0], [1], [0, 0, 1, 1], [], []>} : vector<2x32xbf16>, vector<32x16xbf16>, vector<2x16xf32> -> vector<2x16xf32>
    %22 = vector.broadcast %3 : vector<1x16xf32> to vector<2x16xf32>
    %23 = arith.addf %21, %22 : vector<2x16xf32>
    %24 = vector.extract_strided_slice %23 {offsets = [0, 0], sizes = [2, 8], strides = [1, 1]} : vector<2x16xf32> to vector<2x8xf32>
    %25 = vector.extract_strided_slice %23 {offsets = [0, 8], sizes = [2, 8], strides = [1, 1]} : vector<2x16xf32> to vector<2x8xf32>
    %cst_13 = arith.constant -2.000000e+01 : f32
    %cst_14 = arith.constant 2.000000e+00 : f32
    %26 = vector.broadcast %cst_13 : f32 to vector<2x8xf32>
    %27 = arith.maximumf %26, %25 : vector<2x8xf32>
    %28 = vector.broadcast %cst_14 : f32 to vector<2x8xf32>
    %29 = arith.minimumf %28, %27 : vector<2x8xf32>
    %30 = math.exp %29 : vector<2x8xf32>
    %c0_15 = arith.constant 0 : index
    %c0_16 = arith.constant 0 : index
    %31 = vector.load %arg6[%c0_15, %c0_16] : memref<2x8xf32, #tpu.memory_space<vmem>>, vector<2x8xf32>
    %32 = arith.mulf %30, %31 : vector<2x8xf32>
    %33 = arith.addf %24, %32 : vector<2x8xf32>
    %34 = math.tanh %33 : vector<2x8xf32>
    %cst_17 = arith.constant -5.000000e-01 : f32
    %35 = vector.broadcast %cst_17 : f32 to vector<2x8xf32>
    %36 = arith.mulf %35, %31 : vector<2x8xf32>
    %37 = arith.mulf %36, %31 : vector<2x8xf32>
    %38 = arith.subf %37, %29 : vector<2x8xf32>
    %cst_18 = arith.constant 0.918938517 : f32
    %39 = vector.broadcast %cst_18 : f32 to vector<2x8xf32>
    %40 = arith.subf %38, %39 : vector<2x8xf32>
    %41 = arith.mulf %34, %34 : vector<2x8xf32>
    %cst_19 = arith.constant 1.000000e+00 : f32
    %42 = vector.broadcast %cst_19 : f32 to vector<2x8xf32>
    %43 = arith.subf %42, %41 : vector<2x8xf32>
    %cst_20 = arith.constant 9.99999997E-7 : f32
    %44 = vector.broadcast %cst_20 : f32 to vector<2x8xf32>
    %45 = arith.addf %43, %44 : vector<2x8xf32>
    %46 = math.log %45 : vector<2x8xf32>
    %47 = arith.subf %40, %46 : vector<2x8xf32>
    %cst_21 = arith.constant dense<0.000000e+00> : vector<2xf32>
    %48 = vector.multi_reduction <add>, %47, %cst_21 [1] : vector<2x8xf32> to vector<2xf32>
    %49 = vector.shape_cast %48 : vector<2xf32> to vector<2x1xf32>
    %cst_22 = arith.constant 0.000000e+00 : f32
    %50 = vector.broadcast %cst_22 : f32 to vector<2x87xf32>
    %51 = tpu.concatenate %34, %24, %29, %30, %33, %49, %50 in 1 : vector<2x8xf32>, vector<2x8xf32>, vector<2x8xf32>, vector<2x8xf32>, vector<2x8xf32>, vector<2x1xf32>, vector<2x87xf32> -> vector<2x128xf32>
    %c0_23 = arith.constant 0 : index
    %c0_24 = arith.constant 0 : index
    %52 = vector.load %arg7[%c0_23, %c0_24] : memref<2x128xf32, #tpu.memory_space<vmem>>, vector<2x128xf32>
    tpu.vector_store %arg7[%c0_23, %c0_24], %51 {strides = array<i32>} : memref<2x128xf32, #tpu.memory_space<vmem>>, vector<2x128xf32>,
    return
  }
  func.func @transform_0(%arg0: i32) -> (i32, i32) {
    %c0_i32 = arith.constant 0 : i32
    %c0_i32_0 = arith.constant 0 : i32
    return %arg0, %c0_i32 : i32, i32
  }
  func.func @transform_1(%arg0: i32) -> (i32, i32) {
    %c0_i32 = arith.constant 0 : i32
    %c0_i32_0 = arith.constant 0 : i32
    %c0_i32_1 = arith.constant 0 : i32
    return %c0_i32, %c0_i32_0 : i32, i32
  }
  func.func @transform_2(%arg0: i32) -> (i32, i32) {
    %c0_i32 = arith.constant 0 : i32
    %c0_i32_0 = arith.constant 0 : i32
    %c0_i32_1 = arith.constant 0 : i32
    return %c0_i32, %c0_i32_0 : i32, i32
  }
  func.func @transform_3(%arg0: i32) -> (i32, i32) {
    %c0_i32 = arith.constant 0 : i32
    %c0_i32_0 = arith.constant 0 : i32
    %c0_i32_1 = arith.constant 0 : i32
    return %c0_i32, %c0_i32_0 : i32, i32
  }
  func.func @transform_4(%arg0: i32) -> (i32, i32) {
    %c0_i32 = arith.constant 0 : i32
    %c0_i32_0 = arith.constant 0 : i32
    %c0_i32_1 = arith.constant 0 : i32
    return %c0_i32, %c0_i32_0 : i32, i32
  }
  func.func @transform_5(%arg0: i32) -> (i32, i32) {
    %c0_i32 = arith.constant 0 : i32
    %c0_i32_0 = arith.constant 0 : i32
    return %arg0, %c0_i32 : i32, i32
  }
  func.func @transform_6(%arg0: i32) -> (i32, i32) {
    %c0_i32 = arith.constant 0 : i32
    %c0_i32_0 = arith.constant 0 : i32
    return %arg0, %c0_i32 : i32, i32
  }
}

</mosaic_0001>

<bundles_post_ra>
// kernel: tpu_custom_call.1
= control target key start
LH: loop header
LB: loop body
LE: loop exit
PB: predicated region body
PF: predicated region fallthrough
CT: control target
= control target key end

     0   :  { %11 = vsyncpa [#allocation3], 0  ;;  %s393_s0 = inlined_call_operand.hbm [shape: f32[2,16], index: 0, kind: input, shape index: {}]   ;;  %s394_s1 = inlined_call_operand.vmem [shape: bf16[16,32], index: 1, kind: input, shape index: {}]   ;;  %s395_s2 = inlined_call_operand.vmem [shape: bf16[32,32], index: 2, kind: input, shape index: {}]   ;;  %s396_s3 = inlined_call_operand.vmem [shape: bf16[32,16], index: 3, kind: input, shape index: {}]   ;;  %s397_s4 = inlined_call_operand.vmem [shape: f32[1,80], index: 4, kind: input, shape index: {}]   ;;  %s398_s5 = inlined_call_operand.vmem [shape: f32[2,8], index: 5, kind: input, shape index: {}]   ;;  %s399_s6 = inlined_call_operand.hbm [shape: f32[2,128], index: 6, kind: output, shape index: {}]  }
   0x1   :  { %12 = vsyncpa [#allocation4], 0  ;;  %s18_s23 = sshll.u32 %s393_s0, 4  ;;  %s318_s24 = smov [#allocation2]   ;;  %s19_s23 = int_to_ptr.hbm [resolvable:$true] %s18_s23 }
   0x2   :  { %s20_s25 = sshll.u32 %s318_s24, 4  ;;  %s21_s25 = int_to_ptr.vmem [resolvable:$true] %s20_s25 }
   0x3   :  { %23 = dma.hbm_to_vmem [thread:$0]  %s19_s23, 32, %s21_s25, [#allocation3]  }
   0x4   :  { %314 = dma.done.wait [#allocation3], 32  }
   0x5   :  { %315 = vsyncadd [#allocation3], 4294967264  ;;  %v246_v0 = vld [vmem:[%s394_s1] sm:$0xff]  ;;  %vm53_vm0 = vcmask 130048   ;;  %s319_s0 = smov 96   ;;  %v248_v4 = vld [vmem:[%s395_s2 + $0x8] sm:$0xff] }
   0x6   :  { %v40_v1 = vld [vmem:[#allocation2] sm:$0x3]  ;;  %64 = vmatpush.bf16.msra.mxu0 %v246_v0  ;;  %101 = vmatpush.bf16.msra.mxu1 %v248_v4  ;;  %v250_v6 = vld [vmem:[%s396_s3 + $0x8] sm:$0xff]  ;;  %vm91_vm1 = vcmask 261120   ;;  %s321_s14 = smov 8   ;;  %s324_s15 = smov 32  }
   0x7   :  { %v41_v2 = vpack.c.bf16 %v40_v1, %v40_v1  ;;  %v259_v3 = vld [vmem:[%s397_s4] ss:$0 sm:$0xff]  ;;  %138 = vmatpush.bf16.msra.mxu2 %v250_v6  ;;  %s320_s4 = smov 64   ;;  %vm175_vm2 = vcmask 58368   ;;  %vm194_vm3 = vcmask 64512   ;;  %vm197_vm4 = vcmask 195584  }
   0x8   :  { %88 = vrot.lane.b32.xlu0 %v259_v3, %s319_s0  ;;  %v247_v5 = vld [vmem:[%s395_s2] sm:$0xff]  ;;  %vm200_vm5 = vcmask 326656   ;;  %s325_s16 = smov [#allocation5]   ;;  %s212_s20 = sshll.u32 %s399_s6, 4  ;;  %vm202_vm6 = vcmask 334848   ;;  %s213_s20 = int_to_ptr.hbm [resolvable:$true] %s212_s20 }
   0x9   :  { %226 = vmatmul.msk.bf16.vlgmr.msra.gmra.mxu0 %vm53_vm0, %v41_v2  ;;  %v249_v12 = vld [vmem:[%s396_s3] sm:$0xff]  ;;  %s322_s3 = smov 120   ;;  %s210_s17 = sshll.u32 %s325_s16, 4  ;;  %s211_s17 = int_to_ptr.vmem [resolvable:$true] %s210_s17 }
   0xa   :  { %102 = vmatpush.bf16.msra.mxu1 %v247_v5  ;;  %v149_v13 = vld [vmem:[%s398_s5] sm:$0x3]  ;;  %s323_s5 = smov 16  }
   0xb   :  { %139 = vmatpush.bf16.msra.mxu2 %v249_v12  ;;  %151 = vrot.lane.b32.xlu1 %v149_v13, %s321_s14  ;;  %v161_v34 = vmul.f32 -0.5, %v149_v13 }
   0xd   :  { %v162_v37 = vmul.f32 %v161_v34, %v149_v13 }
  0x10   :  { %126 = vrot.lane.b32.xlu0 %v259_v3, %s320_s4 }
  0x7a   :  { %v89_v14 = vpop.permute.xlu0 %88 }
  0x7d   :  { %v152_v27 = vpop.permute.xlu1 %151 }
  0x82   :  { %v127_v20 = vpop.permute.xlu0 %126 }
  0x86   :  { %v66_v7 = vpop.f32.mrf.mxu0 }
  0x87   :  { %v67_v8 = vadd.f32 %v259_v3, %v66_v7 }
  0x89   :  { %v70_v9 = vmax.f32 %v67_v8, 0.0 }
  0x8b   :  { %v71_v10 = vpack.c.bf16 %v70_v9, %v70_v9 }
  0x8d   :  { %235 = vmatmul.msk.bf16.vlgmr.msra.gmra.mxu1 %vm91_vm1, %v71_v10 }
  0x8e   :  { %v68_v11 = vpop.f32.mrf.mxu0 }
 0x10a   :  { %v104_v15 = vpop.f32.mrf.mxu1 }
 0x10b   :  { %v105_v16 = vadd.f32 %v104_v15, %v89_v14 }
 0x10d   :  { %v108_v17 = vmax.f32 %v105_v16, 0.0 }
 0x10f   :  { %v109_v18 = vpack.c.bf16 %v108_v17, %v108_v17 }
 0x111   :  { %244 = vmatmul.msk.bf16.vlgmr.msra.gmra.mxu2 %vm91_vm1, %v109_v18 }
 0x112   :  { %v106_v19 = vpop.f32.mrf.mxu1 }
 0x194   :  { %v141_v21 = vpop.f32.mrf.mxu2 }
 0x195   :  { %v142_v22 = vadd.f32 %v141_v21, %v127_v20 }
 0x197   :  { %v145_v23 = vmax.f32 %v142_v22, -20.0 }
 0x199   :  { %v146_v24 = vmin.f32 %v145_v23, 2.0 }
 0x19b   :  { %183 = vrot.lane.b32.xlu0 %v146_v24, %s321_s14  ;;  %164 = vrot.lane.b32.xlu2 %v146_v24, %s322_s3  ;;  %v147_v25 = vmul.f32 1.442695, %v146_v24 }
 0x19c   :  { %v143_v26 = vpop.f32.mrf.mxu2 }
 0x19d   :  { %260 = vpow2.f32 %v147_v25 }
 0x1a3   :  { %v261_v28 = vpop.eup %260  ;;  %180 = vrot.lane.b32.xlu2 %v142_v22, %s321_s14 }
 0x1a4   :  { %v154_v29 = vmul.f32 %v261_v28, %v152_v27 }
 0x1a6   :  { %156 = vrot.lane.b32.xlu1 %v154_v29, %s322_s3 }
 0x1ae   :  { %187 = vrot.lane.b32.xlu1 %v261_v28, %s323_s5 }
 0x1f5   :  { %v165_v38 = vpop.permute.xlu2 %164 }
 0x1f6   :  { %v167_v39 = vsub.f32 %v162_v37, %v165_v38 }
 0x1f8   :  { %v245_v41 = vadd.f32 -0.9189385, %v167_v39 }
 0x1fd   :  { %v181_v46 = vpop.permute.xlu2 %180 }
 0x20d   :  { %v184_v45 = vpop.permute.xlu0 %183 }
 0x218   :  { %v157_v30 = vpop.permute.xlu1 %156 }
 0x219   :  { %v159_v31 = vadd.f32 %v157_v30, %v142_v22 }
 0x21b   :  { %262 = vtanh.f32 %v159_v31  ;;  %191 = vrot.lane.b32.xlu0 %v159_v31, %s324_s15 }
 0x220   :  { %v188_v50 = vpop.permute.xlu1 %187 }
 0x221   :  { %v263_v32 = vpop.eup %262 }
 0x222   :  { %v169_v33 = vmul.f32 %v263_v32, %v263_v32  ;;  %v195_v47 = vsel %vm194_vm3, %v263_v32, %v181_v46 }
 0x223   :  { %v196_v48 = vsel %vm53_vm0, %v195_v47, %v184_v45 }
 0x224   :  { %v170_v35 = vsub.f32 1.0, %v169_v33  ;;  %v198_v51 = vsel %vm197_vm4, %v196_v48, %v188_v50 }
 0x226   :  { %v171_v36 = vadd.f32 1e-06, %v170_v35 }
 0x228   :  { %264 = vlog2.f32 %v171_v36 }
 0x22e   :  { %v265_v40 = vpop.eup %264 }
 0x22f   :  { %v173_v42 = vmul.f32 0.6931472, %v265_v40 }
 0x231   :  { %v174_v43 = vsub.f32 %v245_v41, %v173_v42 }
 0x233   :  { %v176_v44 = vsel %vm175_vm2, %v174_v43, 0.0 }
 0x234   :  { %177 = vadd.xlane.f32.xlu2 %v176_v44 }
 0x28d   :  { %v192_v49 = vpop.permute.xlu0 %191 }
 0x28e   :  { %v199_v52 = vsel %vm91_vm1, %v198_v51, %v192_v49 }
 0x2a7   :  { %v178_v53 = vpop.xlane.xlu2 %177 }
 0x2a8   :  { %v201_v54 = vsel %vm200_vm5, %v199_v52, %v178_v53 }
 0x2a9   :  { %v203_v55 = vsel %vm202_vm6, %v201_v54, 0.0 }
 0x2aa   :  { %204 = vst [vmem:[#allocation5] sm:$0x3] %v203_v55 }
 0x2ab   :  { %215 = dma.vmem_to_hbm [thread:$0]  %s211_s17, 32, %s213_s20, [#allocation4]  }
 0x2ac   :  { %316 = dma.done.wait [#allocation4], 32  }
 0x2ad   :  { %317 = vsyncadd [#allocation4], 4294967264 }
 0x2ae   :  { %220 = vsyncpa [#allocation3], 1 }
 0x2af   :  { %221 = vsyncpa [#allocation4], 1 }

</bundles_post_ra>
